<compile_context>
chip_gen: v6e
topology: v6e:2x2x1
jax: 0.10.0
libtpu: 0.0.40
codegen_flags: <defaults>
</compile_context>

<pallas_src>
import functools

import jax
import jax.numpy as jnp
from jax.experimental import pallas as pl
from jax.experimental.pallas import tpu as pltpu


def merge_kernel(attn_ref, sub_ref, obj_ref, msub_ref, mobj_ref, out_ref, *,
                 block_batch):
    """One (TB, n) batch tile of MergeModule + NormAttnMap.

    attn_ref: (TB, n)                sub_ref / obj_ref: (TB, num_seq, n)
    msub_ref / mobj_ref: (BS_pad, num_seq)  -- grid-resident, sliced per tile
    out_ref:  (TB, n)
    """
    map_dtype = sub_ref.dtype
    row0 = pl.multiple_of(pl.program_id(0) * block_batch, block_batch)

    # (mask == 1).float(), matching PyTorch's exact-equality semantics.
    msub = (msub_ref[pl.ds(row0, block_batch), :] == 1).astype(map_dtype)  # (TB, S)
    mobj = (mobj_ref[pl.ds(row0, block_batch), :] == 1).astype(map_dtype)

    # Masked reduction over num_seq as a batched (1 x S) @ (S x n) matvec on the
    # otherwise-idle MXU with f32 accumulation.  No (TB, num_seq, n) f32
    # intermediates are materialized in VMEM, which is what lets the larger
    # batch tiles below fit (especially on v7x's 64 MiB part).
    sub_sum = jnp.einsum(
        "bms,bsn->bmn", msub[:, None, :], sub_ref[...],
        preferred_element_type=jnp.float32,
        precision=jax.lax.Precision.HIGHEST)[:, 0, :]                      # (TB, n)
    obj_sum = jnp.einsum(
        "bms,bsn->bmn", mobj[:, None, :], obj_ref[...],
        preferred_element_type=jnp.float32,
        precision=jax.lax.Precision.HIGHEST)[:, 0, :]

    total = sub_sum + obj_sum + attn_ref[...].astype(jnp.float32)          # (TB, n)

    # NormAttnMap: norm_type='cossim' takes the plain-max branch (the reference
    # compares against the misspelled 'cosssim'), then norm[norm <= 1] = 1.
    norm = jnp.maximum(jnp.max(total, axis=-1, keepdims=True), 1.0)        # (TB, 1)
    # Exact divide: the kernel is HBM-bound, so exact math is free (perf review).
    out_ref[...] = (total / norm).astype(out_ref.dtype)


def _vmem_capacity_bytes():
    try:
        cap = getattr(pltpu.get_tpu_info(), "vmem_capacity_bytes", None)
        if cap:
            return int(cap)
    except Exception:
        pass
    return 64 << 20  # conservative default (v7x per-TensorCore VMEM)


def _pick_block_batch(bs, num_seq, n, map_itemsize, vmem_cap):
    # Target per-map tile: big enough that the ~0.35 us per-grid-step overhead is
    # small even at v7x's ~3.2 TB/s HBM, small enough that
    # 2 maps x 2 pipeline buffers x tile (+ f32 temps) fits the part's VMEM
    # (64 MiB on v7x, 128 MiB on v5e/v6e) with headroom.
    target = min(8 << 20, max(2 << 20, vmem_cap // 12))
    per_batch_row = num_seq * n * map_itemsize
    tb = max(1, target // max(1, per_batch_row))
    tb = min(tb, bs)
    # Keep >= 2 batch blocks whenever that is expressible under the (8,128)
    # rule, so the grid can shard across v7x's two TensorCores and the DMA /
    # compute pipeline has steps to overlap.
    if bs > 8:
        tb = min(tb, max(8, 8 * ((bs // 2) // 8)))
    # (8, 128) rule: the second-minor block dim must be a multiple of 8 or equal
    # the full array dim.
    if tb != bs:
        tb = max(8, (tb // 8) * 8)
        if tb >= bs:
            tb = bs
    # TODO(synk): for bs <= 8 with very large num_seq*n, an n-tiling grid axis
    # (scratch running max + finalize rescale) would keep both v7x cores busy.
    return int(tb)


def merge_forward(attn_map, sub_maps, obj_maps, mask_sub, mask_obj, *,
                  block_batch=None, out_dtype=None):
    bs, num_seq, n = sub_maps.shape
    assert attn_map.shape == (bs, n)
    assert obj_maps.shape == (bs, num_seq, n)
    assert mask_sub.shape == (bs, num_seq) and mask_obj.shape == (bs, num_seq)

    if out_dtype is None:
        # PyTorch parity: result dtype follows the inputs (no forced f32 output).
        out_dtype = jnp.result_type(attn_map.dtype, sub_maps.dtype, obj_maps.dtype)

    vmem_cap = _vmem_capacity_bytes()
    map_itemsize = jnp.dtype(sub_maps.dtype).itemsize
    tb = block_batch if block_batch is not None else _pick_block_batch(
        bs, num_seq, n, map_itemsize, vmem_cap)
    num_blocks = int(pl.cdiv(bs, tb))
    grid = (num_blocks,)

    # The tiny (bs, num_seq) masks stay grid-resident (constant index_map) and
    # are sliced per batch tile inside the kernel -- no per-step mask DMAs.
    # Pad their batch axis to a whole number of blocks so the in-kernel dynamic
    # slice never goes out of bounds on a ragged last block (the padded rows
    # only feed output rows that Pallas' masked writeback discards anyway).
    bs_pad = num_blocks * tb
    if bs_pad != bs:
        pad = ((0, bs_pad - bs), (0, 0))
        mask_sub = jnp.pad(mask_sub, pad)
        mask_obj = jnp.pad(mask_obj, pad)

    # Scoped-VMEM budget: double-buffered tiles + resident masks + in-kernel f32
    # temporaries (total and the two matvec results), with 1.5x headroom.
    n_lanes = 128 * int(pl.cdiv(n, 128))
    seq_sub = 8 * int(pl.cdiv(num_seq, 8))
    seq_lanes = 128 * int(pl.cdiv(num_seq, 128))
    map_tile = tb * seq_sub * n_lanes * map_itemsize
    attn_tile = tb * n_lanes * jnp.dtype(attn_map.dtype).itemsize
    out_tile = tb * n_lanes * jnp.dtype(out_dtype).itemsize
    mask_bytes = bs_pad * seq_lanes * jnp.dtype(mask_sub.dtype).itemsize
    temps = 4 * tb * n_lanes * 4
    est = 2 * (2 * map_tile + attn_tile + out_tile) + 2 * 2 * mask_bytes + temps
    cap = min(vmem_cap * 3 // 4, 96 << 20)
    vmem_limit = int(min(max(est + est // 2, 16 << 20), cap))

    kernel = functools.partial(merge_kernel, block_batch=tb)

    out = pl.pallas_call(
        kernel,
        out_shape=jax.ShapeDtypeStruct((bs, n), out_dtype),
        grid=grid,
        in_specs=[
            pl.BlockSpec((tb, n), lambda i: (i, 0)),
            pl.BlockSpec((tb, num_seq, n), lambda i: (i, 0, 0)),
            pl.BlockSpec((tb, num_seq, n), lambda i: (i, 0, 0)),
            pl.BlockSpec((bs_pad, num_seq), lambda i: (0, 0)),   # grid-resident
            pl.BlockSpec((bs_pad, num_seq), lambda i: (0, 0)),   # grid-resident
        ],
        out_specs=pl.BlockSpec((tb, n), lambda i: (i, 0)),
        compiler_params=pltpu.CompilerParams(
            dimension_semantics=("parallel",),   # batch blocks shard across v7x's 2 TCs
            vmem_limit_bytes=vmem_limit,
        ),
    )(attn_map, sub_maps, obj_maps, mask_sub, mask_obj)
    return out


def merge_reference(attn_map, sub_maps, obj_maps, mask_sub, mask_obj):
    msub = (mask_sub == 1).astype(jnp.float32)[:, :, None]
    mobj = (mask_obj == 1).astype(jnp.float32)[:, :, None]
    total = (msub * sub_maps).sum(1) + (mobj * obj_maps).sum(1) + attn_map
    norm = jnp.max(total, axis=1, keepdims=True)
    norm = jnp.where(norm <= 1.0, 1.0, norm)
    return total / norm


if __name__ == "__main__":
    key = jax.random.PRNGKey(0)

    def make_inputs(k, bs, num_seq, n):
        k1, k2, k3, k4, k5 = jax.random.split(k, 5)
        attn_map = jax.random.normal(k1, (bs, n), dtype=jnp.float32)
        sub_maps = jax.random.normal(k2, (bs, num_seq, n), dtype=jnp.float32)
        obj_maps = jax.random.normal(k3, (bs, num_seq, n), dtype=jnp.float32)
        mask_sub = jax.random.bernoulli(k4, 0.5, (bs, num_seq)).astype(jnp.float32)
        mask_obj = jax.random.bernoulli(k5, 0.5, (bs, num_seq)).astype(jnp.float32)
        return attn_map, sub_maps, obj_maps, mask_sub, mask_obj

    ka, kb = jax.random.split(key)

    # Primary small case: bs=2, num_seq=8, n=256 (flattened 16x16 spatial map).
    args = make_inputs(ka, bs=2, num_seq=8, n=256)
    out = jax.block_until_ready(merge_forward(*args))
    ref = merge_reference(*args)
    assert out.shape == (2, 256) and out.dtype == jnp.float32
    assert jnp.allclose(out, ref, atol=1e-4, rtol=1e-4), "mismatch (aligned case)"

    # Unaligned n (14*14=196) + ragged batch (20 rows, block_batch=8 -> 3 blocks):
    # exercises the no-pad path (full-dim lane blocks, masked stores), the ragged
    # last block, and the zero-padded resident masks.
    args2 = make_inputs(kb, bs=20, num_seq=8, n=196)
    out2 = jax.block_until_ready(merge_forward(*args2, block_batch=8))
    ref2 = merge_reference(*args2)
    assert out2.shape == (20, 196)
    assert jnp.allclose(out2, ref2, atol=1e-4, rtol=1e-4), "mismatch (ragged case)"

    print("KERNEL_OK")
</pallas_src>

<mosaic_0001>
module attributes {stable_mosaic.version = 11 : i64} {
  func.func @merge_kernel(%arg0: i32, %arg1: memref<2x256xf32, #tpu.memory_space<vmem>>, %arg2: memref<2x8x256xf32, #tpu.memory_space<vmem>>, %arg3: memref<2x8x256xf32, #tpu.memory_space<vmem>>, %arg4: memref<2x8xf32, #tpu.memory_space<vmem>>, %arg5: memref<2x8xf32, #tpu.memory_space<vmem>>, %arg6: memref<2x256xf32, #tpu.memory_space<vmem>>) attributes {dimension_semantics = [#tpu.dimension_semantics<parallel>], iteration_bounds = array<i64: 1>, scalar_prefetch = 0 : i64, scratch_operands = 0 : i64, tpu.core_type = #tpu.core_type<tc>, window_params = [{transform_indices = @transform_0, window_bounds = array<i64: 2, 256>}, {transform_indices = @transform_1, window_bounds = array<i64: 2, 8, 256>}, {transform_indices = @transform_2, window_bounds = array<i64: 2, 8, 256>}, {pipeline_mode = #tpu.pipeline_mode<synchronous>, transform_indices = @transform_3, window_bounds = array<i64: 2, 8>}, {pipeline_mode = #tpu.pipeline_mode<synchronous>, transform_indices = @transform_4, window_bounds = array<i64: 2, 8>}, {transform_indices = @transform_5, window_bounds = array<i64: 2, 256>}]} {
    %c2_i32 = arith.constant 2 : i32
    %0 = arith.muli %arg0, %c2_i32 : i32
    %1 = tpu.assume_multiple %0, 2 : i32
    %2 = arith.index_cast %1 : i32 to index
    %c0 = arith.constant 0 : index
    %3 = vector.load %arg4[%2, %c0] : memref<2x8xf32, #tpu.memory_space<vmem>>, vector<2x8xf32>
    %cst = arith.constant 1.000000e+00 : f32
    %4 = vector.broadcast %cst : f32 to vector<2x8xf32>
    %5 = arith.cmpf oeq, %3, %4 : vector<2x8xf32>
    %6 = arith.extui %5 : vector<2x8xi1> to vector<2x8xi32>
    %7 = arith.sitofp %6 : vector<2x8xi32> to vector<2x8xf32>
    %8 = arith.index_cast %1 : i32 to index
    %c0_0 = arith.constant 0 : index
    %9 = vector.load %arg5[%8, %c0_0] : memref<2x8xf32, #tpu.memory_space<vmem>>, vector<2x8xf32>
    %cst_1 = arith.constant 1.000000e+00 : f32
    %10 = vector.broadcast %cst_1 : f32 to vector<2x8xf32>
    %11 = arith.cmpf oeq, %9, %10 : vector<2x8xf32>
    %12 = arith.extui %11 : vector<2x8xi1> to vector<2x8xi32>
    %13 = arith.sitofp %12 : vector<2x8xi32> to vector<2x8xf32>
    %14 = vector.shape_cast %7 : vector<2x8xf32> to vector<2x1x8xf32>
    %c0_2 = arith.constant 0 : index
    %c0_3 = arith.constant 0 : index
    %c0_4 = arith.constant 0 : index
    %15 = vector.load %arg2[%c0_2, %c0_3, %c0_4] : memref<2x8x256xf32, #tpu.memory_space<vmem>>, vector<2x8x256xf32>
    "tpu.trace_start"() <{level = 10 : i32, message = "bms,bsn->bmn"}> : () -> ()
    %cst_5 = arith.constant dense<0.000000e+00> : vector<2x1x256xf32>
    %16 = tpu.matmul %14, %15, %cst_5 {dimension_numbers = #tpu.dot_dimension_numbers<[2], [1], [1], [2], [0, 0, 0, 1, 1, 2], [0], [0]>, precision = #tpu.contract_precision<fp32>} : vector<2x1x8xf32>, vector<2x8x256xf32>, vector<2x1x256xf32> -> vector<2x1x256xf32>
    "tpu.trace_stop"() : () -> ()
    %17 = vector.shape_cast %16 : vector<2x1x256xf32> to vector<2x256xf32>
    %18 = vector.shape_cast %13 : vector<2x8xf32> to vector<2x1x8xf32>
    %c0_6 = arith.constant 0 : index
    %c0_7 = arith.constant 0 : index
    %c0_8 = arith.constant 0 : index
    %19 = vector.load %arg3[%c0_6, %c0_7, %c0_8] : memref<2x8x256xf32, #tpu.memory_space<vmem>>, vector<2x8x256xf32>
    "tpu.trace_start"() <{level = 10 : i32, message = "bms,bsn->bmn"}> : () -> ()
    %cst_9 = arith.constant dense<0.000000e+00> : vector<2x1x256xf32>
    %20 = tpu.matmul %18, %19, %cst_9 {dimension_numbers = #tpu.dot_dimension_numbers<[2], [1], [1], [2], [0, 0, 0, 1, 1, 2], [0], [0]>, precision = #tpu.contract_precision<fp32>} : vector<2x1x8xf32>, vector<2x8x256xf32>, vector<2x1x256xf32> -> vector<2x1x256xf32>
    "tpu.trace_stop"() : () -> ()
    %21 = vector.shape_cast %20 : vector<2x1x256xf32> to vector<2x256xf32>
    %22 = arith.addf %17, %21 : vector<2x256xf32>
    %c0_10 = arith.constant 0 : index
    %c0_11 = arith.constant 0 : index
    %23 = vector.load %arg1[%c0_10, %c0_11] : memref<2x256xf32, #tpu.memory_space<vmem>>, vector<2x256xf32>
    %24 = arith.addf %22, %23 : vector<2x256xf32>
    %cst_12 = arith.constant dense<0xFF800000> : vector<2xf32>
    %25 = vector.multi_reduction <maximumf>, %24, %cst_12 [1] : vector<2x256xf32> to vector<2xf32>
    %26 = vector.shape_cast %25 : vector<2xf32> to vector<2x1xf32>
    %cst_13 = arith.constant 1.000000e+00 : f32
    %27 = vector.broadcast %cst_13 : f32 to vector<2x1xf32>
    %28 = arith.maximumf %26, %27 : vector<2x1xf32>
    %29 = vector.broadcast %28 : vector<2x1xf32> to vector<2x256xf32>
    %30 = arith.divf %24, %29 : vector<2x256xf32>
    %c0_14 = arith.constant 0 : index
    %c0_15 = arith.constant 0 : index
    %31 = vector.load %arg6[%c0_14, %c0_15] : memref<2x256xf32, #tpu.memory_space<vmem>>, vector<2x256xf32>
    tpu.vector_store %arg6[%c0_14, %c0_15], %30 {strides = array<i32>} : memref<2x256xf32, #tpu.memory_space<vmem>>, vector<2x256xf32>,
    return
  }
  func.func @transform_0(%arg0: i32) -> (i32, i32) {
    %c0_i32 = arith.constant 0 : i32
    %c0_i32_0 = arith.constant 0 : i32
    return %arg0, %c0_i32 : i32, i32
  }
  func.func @transform_1(%arg0: i32) -> (i32, i32, i32) {
    %c0_i32 = arith.constant 0 : i32
    %c0_i32_0 = arith.constant 0 : i32
    %c0_i32_1 = arith.constant 0 : i32
    return %arg0, %c0_i32, %c0_i32_0 : i32, i32, i32
  }
  func.func @transform_2(%arg0: i32) -> (i32, i32, i32) {
    %c0_i32 = arith.constant 0 : i32
    %c0_i32_0 = arith.constant 0 : i32
    %c0_i32_1 = arith.constant 0 : i32
    return %arg0, %c0_i32, %c0_i32_0 : i32, i32, i32
  }
  func.func @transform_3(%arg0: i32) -> (i32, i32) {
    %c0_i32 = arith.constant 0 : i32
    %c0_i32_0 = arith.constant 0 : i32
    %c0_i32_1 = arith.constant 0 : i32
    return %c0_i32, %c0_i32_0 : i32, i32
  }
  func.func @transform_4(%arg0: i32) -> (i32, i32) {
    %c0_i32 = arith.constant 0 : i32
    %c0_i32_0 = arith.constant 0 : i32
    %c0_i32_1 = arith.constant 0 : i32
    return %c0_i32, %c0_i32_0 : i32, i32
  }
  func.func @transform_5(%arg0: i32) -> (i32, i32) {
    %c0_i32 = arith.constant 0 : i32
    %c0_i32_0 = arith.constant 0 : i32
    return %arg0, %c0_i32 : i32, i32
  }
}

</mosaic_0001>

<bundles_post_ra>
// kernel: tpu_custom_call.1
= control target key start
LH: loop header
LB: loop body
LE: loop exit
PB: predicated region body
PF: predicated region fallthrough
CT: control target
= control target key end

     0   :  { %10 = vsyncpa [#allocation3], 0  ;;  %s2416_s0 = inlined_call_operand.hbm [shape: f32[2,256], index: 0, kind: input, shape index: {}]   ;;  %s2417_s1 = inlined_call_operand.hbm [shape: f32[2,8,256], index: 1, kind: input, shape index: {}]   ;;  %s2418_s2 = inlined_call_operand.hbm [shape: f32[2,8,256], index: 2, kind: input, shape index: {}]   ;;  %s2419_s3 = inlined_call_operand.vmem [shape: f32[2,8], index: 3, kind: input, shape index: {}]   ;;  %s2420_s4 = inlined_call_operand.vmem [shape: f32[2,8], index: 4, kind: input, shape index: {}]   ;;  %s2421_s5 = inlined_call_operand.hbm [shape: f32[2,256], index: 5, kind: output, shape index: {}]  }
   0x1   :  { %11 = vsyncpa [#allocation6], 0 }
   0x2   :  { %12 = vsyncpa [#allocation4], 0  ;;  %s2198_s18 = smov [#allocation5]  }
   0x3   :  { %s28_s19 = sshll.u32 %s2198_s18, 4  ;;  %s29_s19 = int_to_ptr.vmem [resolvable:$true] %s28_s19 }
   0x4   :  { %s2120_s20 = scalar_lea.vmem %s29_s19, 512  ;;  %p2125_p1 = scmp.lt.s32.totalorder %s29_s19, %s29_s19 }
   0x5   :  { %p2121_p0 = scmp.ne.s32.totalorder %s29_s19, %s2120_s20  ;;  %p2126_p2 = scmp.lt.s32.totalorder %s2120_s20, %s2120_s20 }
   0x7   :  { %p2127_p3 = por %p2126_p2, %p2125_p1 }
   0x9   :  { %p2128_p4 = pnand %p2127_p3, %p2121_p0 }
   0xb   :  { %2131 = shalt.err (!%p2128_p4)
}
   0xc   :  { %s2199_s21 = smov 256   ;;  %s2200_s22 = smov 16  }
   0xd   :  { %34 = dma.hbm_to_vmem [thread:$0]  %s2417_s1, 512, %s29_s19, [#allocation6], %s2199_s21, %s2199_s21, %s2200_s22  }
   0xe   :  { %s2201_s25 = smov [#allocation2]   ;;  %s2202_s27 = smov [#allocation7]  }
   0xf   :  { %s19_s26 = sshll.u32 %s2201_s25, 4  ;;  %s40_s28 = sshll.u32 %s2202_s27, 4  ;;  %s20_s26 = int_to_ptr.vmem [resolvable:$true] %s19_s26  ;;  %s41_s28 = int_to_ptr.vmem [resolvable:$true] %s40_s28 }
  0x10   :  { %s2140_s29 = scalar_lea.vmem %s20_s26, 64  ;;  %p2145_p6 = scmp.lt.s32.totalorder %s20_s26, %s20_s26 }
  0x11   :  { %p2141_p5 = scmp.ne.s32.totalorder %s20_s26, %s2140_s29  ;;  %p2146_p7 = scmp.lt.s32.totalorder %s2140_s29, %s2140_s29 }
  0x13   :  { %p2147_p8 = por %p2146_p7, %p2145_p6 }
  0x15   :  { %p2148_p9 = pnand %p2147_p8, %p2141_p5 }
  0x17   :  { %2151 = shalt.err (!%p2148_p9)
}
  0x18   :  { %22 = dma.hbm_to_vmem [thread:$0]  %s2416_s0, 64, %s20_s26, [#allocation3]  }
  0x19   :  { %s2160_s7 = scalar_lea.vmem %s41_s28, 512  ;;  %p2165_p11 = scmp.lt.s32.totalorder %s41_s28, %s41_s28 }
  0x1a   :  { %p2161_p10 = scmp.ne.s32.totalorder %s41_s28, %s2160_s7  ;;  %p2166_p12 = scmp.lt.s32.totalorder %s2160_s7, %s2160_s7 }
  0x1c   :  { %p2167_p13 = por %p2166_p12, %p2165_p11 }
  0x1e   :  { %p2168_p0 = pnand %p2167_p13, %p2161_p10 }
  0x20   :  { %2171 = shalt.err (!%p2168_p0)
}
  0x21   :  { %46 = dma.hbm_to_vmem [thread:$0]  %s2418_s2, 512, %s41_s28, [#allocation6], %s2199_s21, %s2199_s21, %s2200_s22  }
  0x22   :  { %2192 = dma.done.wait [#allocation3], 64  }
  0x23   :  { %2193 = vsyncadd [#allocation3], 4294967232 }
  0x24   :  { %2194 = dma.done.wait [#allocation6], 1024  }
  0x25   :  { %2195 = vsyncadd [#allocation6], 4294966272  ;;  %v75_v0 = vlaneseq  ;;  %v2203_v1 = vmov 0.0   ;;  %v2204_v2 = vmov 1966171168   ;;  %v95_v7 = vld [vmem:[#allocation5 + $0x8] sm:$0xff] }
  0x26   :  { %167 = vmatprep.mubr.f32.mxu0 %v2203_v1  ;;  %253 = vmatprep.mubr.f32.mxu1 %v2203_v1  ;;  %v73_v3 = vunpack.c.l.s4 %v2204_v2  ;;  %v94_v8 = vld [vmem:[#allocation5] sm:$0xff]  ;;  %v62_v9 = vld [vmem:[%s2419_s3] sm:$0x3]  ;;  %v131_v10 = vand.u32 4294901760, %v95_v7  ;;  %v96_v13 = vld [vmem:[#allocation5 + $0x10] sm:$0xff]  ;;  %vm98_vm1 = vcmask 64512  }
  0x27   :  { %v2248_v4 = vshrl.u32 %v75_v0, 7  ;;  %v133_v11 = vand.u32 4294901760, %v94_v8  ;;  %vm63_vm0 = vcmp.eq.f32.partialorder %v62_v9, 1.0  ;;  %v97_v12 = vld [vmem:[#allocation5 + $0x18] sm:$0xff]  ;;  %v2259_v16 = vand.u32 4294901760, %v96_v13  ;;  %v1057_v39 = vld [vmem:[#allocation7 + $0x8] sm:$0xff] }
  0x28   :  { %v74_v5 = vunpack.c.0.s8 %v73_v3  ;;  %v2096_v14 = vsel %vm63_vm0, 1.0, %v2203_v1  ;;  %v2257_v15 = vand.u32 4294901760, %v97_v12  ;;  %132 = vmatprep.subr.mxu0 %v131_v10  ;;  %v210_v17 = vsub.f32 %v95_v7, %v131_v10  ;;  %v67_v25 = vld [vmem:[%s2420_s4] sm:$0x3]  ;;  %v1056_v40 = vld [vmem:[#allocation7] sm:$0xff]  ;;  %v1058_v63 = vld [vmem:[#allocation7 + $0x10] sm:$0xff] }
  0x29   :  { %v2261_v18 = vsub.f32 %v94_v8, %v133_v11  ;;  %134 = vmatpush1.msra.mxu0 %v133_v11  ;;  %v2273_v26 = vsub.f32 %v96_v13, %v2259_v16  ;;  %vm68_vm2 = vcmp.eq.f32.partialorder %v67_v25, 1.0  ;;  %v2288_v45 = vand.u32 4294901760, %v1057_v39  ;;  %v1059_v62 = vld [vmem:[#allocation7 + $0x18] sm:$0xff]  ;;  %s2206_s4 = smov [#allocation8]  }
  0x2a   :  { %v2251_v6 = vsub.s32 %v74_v5, %v2248_v4  ;;  %v2265_v20 = vsub.f32 %v97_v12, %v2257_v15  ;;  %v211_v21 = vand.u32 4294901760, %v210_v17  ;;  %293 = vmatprep.subr.mxu0 %v210_v17  ;;  %v2097_v41 = vsel %vm68_vm2, 1.0, %v2203_v1  ;;  %s2086_s10 = sshll.u32 %s2206_s4, 4  ;;  %s2087_s10 = int_to_ptr.vmem [resolvable:$true] %s2086_s10 }
  0x2b   :  { %v217_v22 = vand.u32 4294901760, %v2261_v18  ;;  %v684_v37 = vand.u32 4294901760, %v2273_v26  ;;  %v2297_v49 = vand.u32 4294901760, %v1056_v40  ;;  %v2301_v53 = vsub.f32 %v1057_v39, %v2288_v45  ;;  %s2172_s11 = scalar_lea.vmem %s2087_s10, 64  ;;  %p2177_p2 = scmp.lt.s32.totalorder %s2087_s10, %s2087_s10 }
  0x2c   :  { %v78_v19 = vrot.slane %v2096_v14, %v2251_v6  ;;  %v212_v27 = vsub.f32 %v210_v17, %v211_v21  ;;  %v678_v34 = vand.u32 4294901760, %v2265_v20  ;;  %v1040_v43 = vrot.slane %v2097_v41, %v2251_v6  ;;  %p2173_p1 = scmp.ne.s32.totalorder %s2087_s10, %s2172_s11  ;;  %p2178_p3 = scmp.lt.s32.totalorder %s2172_s11, %s2172_s11 }
  0x2d   :  { %v218_v28 = vsub.f32 %v2261_v18, %v217_v22  ;;  %v685_v47 = vsub.f32 %v2273_v26, %v684_v37  ;;  %v2305_v56 = vsub.f32 %v1056_v40, %v2297_v49  ;;  %v1172_v58 = vand.u32 4294901760, %v2301_v53 }
  0x2e   :  { %v79_v23 = vcombine.high %v78_v19, %v78_v19  ;;  %v86_v24 = vrot.slane %v78_v19, %v2251_v6  ;;  %v213_v32 = vand.u32 4294901760, %v212_v27  ;;  %v679_v44 = vsub.f32 %v2265_v20, %v678_v34  ;;  %p2179_p4 = por %p2178_p3, %p2177_p2 }
  0x2f   :  { %v219_v33 = vand.u32 4294901760, %v218_v28  ;;  %v1048_v50 = vrot.slane %v1040_v43, %v2251_v6  ;;  %v686_v54 = vand.u32 4294901760, %v685_v47  ;;  %v1178_v60 = vand.u32 4294901760, %v2305_v56 }
  0x30   :  { %v99_v29 = vsel %vm98_vm1, %v86_v24, 0  ;;  %v93_v30 = vrot.slane %v79_v23, %v2251_v6  ;;  %214 = vmatprep.subr.mxu1 %v213_v32  ;;  %v680_v52 = vand.u32 4294901760, %v679_v44  ;;  %v1041_v0 = vcombine.high %v1040_v43, %v1040_v43  ;;  %p2180_p5 = pnand %p2179_p4, %p2173_p1 }
  0x31   :  { %v168_v31 = vand.u32 4294901760, %v99_v29  ;;  %220 = vmatpush1.msra.mxu1 %v219_v33  ;;  %v1060_v57 = vsel %vm98_vm1, %v1048_v50, 0  ;;  %v1173_v2 = vsub.f32 %v2301_v53, %v1172_v58  ;;  %v2324_v3 = vand.u32 4294901760, %v1059_v62 }
  0x32   :  { %v566_v35 = vsel %vm98_vm1, %v93_v30, 0  ;;  %369 = vmatprep.subr.mxu1 %v131_v10  ;;  %v2314_v61 = vand.u32 4294901760, %v1060_v57  ;;  %v1179_v7 = vsub.f32 %v2305_v56, %v1178_v60  ;;  %v2331_v9 = vand.u32 4294901760, %v1058_v63 }
  0x33   :  { %v169_v36 = vsub.f32 %v99_v29, %v168_v31  ;;  %v2281_v38 = vand.u32 4294901760, %v566_v35  ;;  %255 = vmatmul.mubr.f32.vlgmr.msra.gmra.mxu1 %v168_v31  ;;  %v2340_v12 = vsub.f32 %v1059_v62, %v2324_v3  ;;  %vm2023_vm3 = vcmask 1041409  }
  0x34   :  { %371 = vmatpush1.msra.mxu1 %v133_v11  ;;  %404 = vmatprep.mubr.f32.mxu1 %v2203_v1  ;;  %v1130_v8 = vsub.f32 %v1060_v57, %v2314_v61  ;;  %v1180_v13 = vand.u32 4294901760, %v1179_v7  ;;  %v2344_v17 = vsub.f32 %v1058_v63, %v2331_v9  ;;  %vm2029_vm4 = vcmask 1041408  }
  0x35   :  { %v170_v42 = vand.u32 4294901760, %v169_v36  ;;  %v2295_v48 = vsub.f32 %v566_v35, %v2281_v38  ;;  %523 = vmatprep.subr.mxu1 %v131_v10  ;;  %v1055_v10 = vrot.slane %v1041_v0, %v2251_v6  ;;  %vm2072_vm5 = vcmask 1043459  }
  0x36   :  { %v1131_v14 = vand.u32 4294901760, %v1130_v8  ;;  %vm2074_vm6 = vcmask 1045509   ;;  %vm2076_vm7 = vcmask 1047559  }
  0x37   :  { %v171_v46 = vsub.f32 %v169_v36, %v170_v42  ;;  %408 = vmatmul.mubr.f32.vlgmr.msra.gmra.mxu1 %v170_v42  ;;  %v637_v55 = vand.u32 4294901760, %v2295_v48  ;;  %v1527_v6 = vsel %vm98_vm1, %v1055_v10, 0 }
  0x38   :  { %525 = vmatpush1.msra.mxu1 %v133_v11  ;;  %558 = vmatprep.mubr.f32.mxu1 %v2203_v1  ;;  %v1174_v11 = vand.u32 4294901760, %v1173_v2  ;;  %v1596_v19 = vand.u32 4294901760, %v1527_v6 }
  0x39   :  { %v172_v51 = vand.u32 4294901760, %v171_v46  ;;  %681 = vmatprep.subr.mxu1 %v680_v52  ;;  %v638_v59 = vsub.f32 %v2295_v48, %v637_v55 }
  0x3a   :  { %v1597_v23 = vsub.f32 %v1527_v6, %v1596_v19 }
  0x3b   :  { %173 = vmatmul.mubr.f32.vlgmr.msra.gmra.mxu0 %v172_v51  ;;  %560 = vmatmul.mubr.f32.vlgmr.msra.gmra.mxu1 %v168_v31  ;;  %v639_v5 = vand.u32 4294901760, %v638_v59 }
  0x3c   :  { %296 = vmatpush1.msra.mxu0 %v2261_v18  ;;  %329 = vmatprep.mubr.f32.mxu0 %v2203_v1  ;;  %v1645_v18 = vand.u32 4294901760, %v2344_v17 }
  0x3d   :  { %447 = vmatprep.subr.mxu0 %v211_v21  ;;  %687 = vmatpush1.msra.mxu1 %v686_v54 }
  0x3e   :  { %720 = vmatprep.mubr.f32.mxu1 %v2203_v1  ;;  %836 = vmatprep.subr.mxu1 %v2257_v15 }
  0x3f   :  { %332 = vmatmul.mubr.f32.vlgmr.msra.gmra.mxu0 %v169_v36  ;;  %722 = vmatmul.mubr.f32.vlgmr.msra.gmra.mxu1 %v2281_v38 }
  0x40   :  { %451 = vmatpush1.msra.mxu0 %v217_v22  ;;  %484 = vmatprep.mubr.f32.mxu0 %v2203_v1  ;;  %v1646_v22 = vsub.f32 %v2344_v17, %v1645_v18 }
  0x41   :  { %599 = vmatprep.subr.mxu0 %v2257_v15  ;;  %838 = vmatpush1.msra.mxu1 %v2259_v16 }
  0x42   :  { %871 = vmatprep.mubr.f32.mxu1 %v2203_v1  ;;  %990 = vmatprep.subr.mxu1 %v2257_v15  ;;  %v1639_v15 = vand.u32 4294901760, %v2340_v12  ;;  %v1647_v25 = vand.u32 4294901760, %v1646_v22 }
  0x43   :  { %486 = vmatmul.mubr.f32.vlgmr.msra.gmra.mxu0 %v168_v31  ;;  %875 = vmatmul.mubr.f32.vlgmr.msra.gmra.mxu1 %v637_v55 }
  0x44   :  { %601 = vmatpush1.msra.mxu0 %v2259_v16  ;;  %634 = vmatprep.mubr.f32.mxu0 %v2203_v1 }
  0x45   :  { %760 = vmatprep.subr.mxu0 %v2265_v20  ;;  %992 = vmatpush1.msra.mxu1 %v2259_v16  ;;  %v1132_v16 = vsub.f32 %v1130_v8, %v1131_v14  ;;  %v1640_v20 = vsub.f32 %v2340_v12, %v1639_v15 }
  0x46   :  { %1025 = vmatprep.mubr.f32.mxu1 %v2203_v1  ;;  %1175 = vmatprep.subr.mxu1 %v1174_v11 }
  0x47   :  { %640 = vmatmul.mubr.f32.vlgmr.msra.gmra.mxu0 %v639_v5  ;;  %1027 = vmatmul.mubr.f32.vlgmr.msra.gmra.mxu1 %v2281_v38  ;;  %v1133_v21 = vand.u32 4294901760, %v1132_v16  ;;  %v1641_v24 = vand.u32 4294901760, %v1640_v20 }
  0x48   :  { %763 = vmatpush1.msra.mxu0 %v2273_v26  ;;  %796 = vmatprep.mubr.f32.mxu0 %v2203_v1  ;;  %v1598_v26 = vand.u32 4294901760, %v1597_v23 }
  0x49   :  { %914 = vmatprep.subr.mxu0 %v678_v34  ;;  %1181 = vmatpush1.msra.mxu1 %v1180_v13 }
  0x4a   :  { %1214 = vmatprep.mubr.f32.mxu1 %v2203_v1  ;;  %1330 = vmatprep.subr.mxu1 %v2288_v45  ;;  %v1599_v27 = vsub.f32 %v1597_v23, %v1598_v26 }
  0x4b   :  { %799 = vmatmul.mubr.f32.vlgmr.msra.gmra.mxu0 %v2295_v48  ;;  %1216 = vmatmul.mubr.f32.vlgmr.msra.gmra.mxu1 %v2314_v61 }
  0x4c   :  { %918 = vmatpush1.msra.mxu0 %v684_v37  ;;  %951 = vmatprep.mubr.f32.mxu0 %v2203_v1  ;;  %v1600_v28 = vand.u32 4294901760, %v1599_v27 }
  0x4d   :  { %1093 = vmatprep.subr.mxu0 %v2288_v45  ;;  %1332 = vmatpush1.msra.mxu1 %v2297_v49 }
  0x4e   :  { %1365 = vmatprep.mubr.f32.mxu1 %v2203_v1  ;;  %1484 = vmatprep.subr.mxu1 %v2288_v45 }
  0x4f   :  { %953 = vmatmul.mubr.f32.vlgmr.msra.gmra.mxu0 %v2281_v38  ;;  %1369 = vmatmul.mubr.f32.vlgmr.msra.gmra.mxu1 %v1131_v14 }
  0x50   :  { %1095 = vmatpush1.msra.mxu0 %v2297_v49  ;;  %1128 = vmatprep.mubr.f32.mxu0 %v2203_v1 }
  0x51   :  { %1254 = vmatprep.subr.mxu0 %v2301_v53  ;;  %1486 = vmatpush1.msra.mxu1 %v2297_v49 }
  0x52   :  { %1519 = vmatprep.mubr.f32.mxu1 %v2203_v1  ;;  %1642 = vmatprep.subr.mxu1 %v1641_v24 }
  0x53   :  { %1134 = vmatmul.mubr.f32.vlgmr.msra.gmra.mxu0 %v1133_v21  ;;  %1521 = vmatmul.mubr.f32.vlgmr.msra.gmra.mxu1 %v2314_v61 }
  0x54   :  { %1257 = vmatpush1.msra.mxu0 %v2305_v56  ;;  %1290 = vmatprep.mubr.f32.mxu0 %v2203_v1 }
  0x55   :  { %1408 = vmatprep.subr.mxu0 %v1172_v58  ;;  %1648 = vmatpush1.msra.mxu1 %v1647_v25 }
  0x56   :  { %1681 = vmatprep.mubr.f32.mxu1 %v2203_v1  ;;  %1797 = vmatprep.subr.mxu1 %v2324_v3 }
  0x57   :  { %1293 = vmatmul.mubr.f32.vlgmr.msra.gmra.mxu0 %v1130_v8  ;;  %1683 = vmatmul.mubr.f32.vlgmr.msra.gmra.mxu1 %v1596_v19 }
  0x58   :  { %1412 = vmatpush1.msra.mxu0 %v1178_v60  ;;  %1445 = vmatprep.mubr.f32.mxu0 %v2203_v1 }
  0x59   :  { %1560 = vmatprep.subr.mxu0 %v2324_v3  ;;  %1799 = vmatpush1.msra.mxu1 %v2331_v9 }
  0x5a   :  { %1832 = vmatprep.mubr.f32.mxu1 %v2203_v1  ;;  %1951 = vmatprep.subr.mxu1 %v2324_v3 }
  0x5b   :  { %1447 = vmatmul.mubr.f32.vlgmr.msra.gmra.mxu0 %v2314_v61  ;;  %1836 = vmatmul.mubr.f32.vlgmr.msra.gmra.mxu1 %v1598_v26 }
  0x5c   :  { %1562 = vmatpush1.msra.mxu0 %v2331_v9  ;;  %1595 = vmatprep.mubr.f32.mxu0 %v2203_v1 }
  0x5d   :  { %1721 = vmatprep.subr.mxu0 %v2340_v12  ;;  %1953 = vmatpush1.msra.mxu1 %v2331_v9 }
  0x5e   :  { %1986 = vmatprep.mubr.f32.mxu1 %v2203_v1 }
  0x5f   :  { %1601 = vmatmul.mubr.f32.vlgmr.msra.gmra.mxu0 %v1600_v28  ;;  %1988 = vmatmul.mubr.f32.vlgmr.msra.gmra.mxu1 %v1596_v19 }
  0x60   :  { %1724 = vmatpush1.msra.mxu0 %v2344_v17  ;;  %1757 = vmatprep.mubr.f32.mxu0 %v2203_v1 }
  0x61   :  { %1875 = vmatprep.subr.mxu0 %v1639_v15 }
  0x63   :  { %1760 = vmatmul.mubr.f32.vlgmr.msra.gmra.mxu0 %v1597_v23 }
  0x64   :  { %1879 = vmatpush1.msra.mxu0 %v1645_v18  ;;  %1912 = vmatprep.mubr.f32.mxu0 %v2203_v1 }
  0x67   :  { %1914 = vmatmul.mubr.f32.vlgmr.msra.gmra.mxu0 %v1596_v19 }
  0xf3   :  { %v256_v29 = vpop.f32.mrf.mxu1 }
  0xf5   :  { %v258_v30 = vpop.f32.mrf.mxu1 }
  0xf7   :  { %v409_v31 = vpop.f32.mrf.mxu1 }
  0xf9   :  { %v411_v33 = vpop.f32.mrf.mxu1 }
  0xfb   :  { %v174_v32 = vpop.f32.mrf.mxu0  ;;  %v2397_v35 = vpop.f32.mrf.mxu1 }
  0xfc   :  { %v257_v0 = vadd.f32 %v256_v29, %v174_v32 }
  0xfd   :  { %v176_v34 = vpop.f32.mrf.mxu0  ;;  %v2399_v37 = vpop.f32.mrf.mxu1 }
  0xfe   :  { %v259_v9 = vadd.f32 %v258_v30, %v176_v34 }
  0xff   :  { %v333_v36 = vpop.f32.mrf.mxu0  ;;  %v723_v39 = vpop.f32.mrf.mxu1 }
 0x100   :  { %v334_v10 = vadd.f32 %v333_v36, %v257_v0 }
 0x101   :  { %v335_v38 = vpop.f32.mrf.mxu0  ;;  %v725_v41 = vpop.f32.mrf.mxu1 }
 0x102   :  { %v336_v17 = vadd.f32 %v335_v38, %v259_v9  ;;  %v410_v19 = vadd.f32 %v409_v31, %v334_v10  ;;  %v2098_v38 = vld.sshfl [vmem:[#allocation2] sm:$0x33 pattern:$0x76325410] }
 0x103   :  { %v487_v40 = vpop.f32.mrf.mxu0  ;;  %v876_v43 = vpop.f32.mrf.mxu1 }
 0x104   :  { %v412_v24 = vadd.f32 %v411_v33, %v336_v17  ;;  %v488_v32 = vadd.f32 %v487_v40, %v410_v19 }
 0x105   :  { %v489_v42 = vpop.f32.mrf.mxu0  ;;  %v878_v1 = vpop.f32.mrf.mxu1 }
 0x107   :  { %v641_v44 = vpop.f32.mrf.mxu0  ;;  %v2401_v46 = vpop.f32.mrf.mxu1 }
 0x108   :  { %v724_v3 = vadd.f32 %v723_v39, %v641_v44 }
 0x109   :  { %v643_v45 = vpop.f32.mrf.mxu0  ;;  %v2403_v48 = vpop.f32.mrf.mxu1 }
 0x10a   :  { %v726_v12 = vadd.f32 %v725_v41, %v643_v45  ;;  %v490_v45 = vadd.f32 %v489_v42, %v412_v24 }
 0x10b   :  { %v800_v47 = vpop.f32.mrf.mxu0  ;;  %v1217_v50 = vpop.f32.mrf.mxu1 }
 0x10c   :  { %v801_v13 = vadd.f32 %v800_v47, %v724_v3 }
 0x10d   :  { %v802_v49 = vpop.f32.mrf.mxu0  ;;  %v1219_v52 = vpop.f32.mrf.mxu1 }
 0x10e   :  { %v803_v16 = vadd.f32 %v802_v49, %v726_v12  ;;  %v877_v21 = vadd.f32 %v876_v43, %v801_v13 }
 0x10f   :  { %v954_v51 = vpop.f32.mrf.mxu0  ;;  %v1370_v54 = vpop.f32.mrf.mxu1 }
 0x110   :  { %v879_v27 = vadd.f32 %v878_v1, %v803_v16  ;;  %v955_v36 = vadd.f32 %v954_v51, %v877_v21  ;;  %v2007_v1 = vcombine.high %v2098_v38, %v2098_v38 }
 0x111   :  { %v956_v53 = vpop.f32.mrf.mxu0  ;;  %v1372_v56 = vpop.f32.mrf.mxu1 }
 0x112   :  { %v957_v43 = vadd.f32 %v956_v53, %v879_v27  ;;  %v1029_v40 = vadd.f32 %v2401_v46, %v955_v36  ;;  %v2009_v42 = vrot.slane %v2007_v1, 1 }
 0x113   :  { %v1135_v55 = vpop.f32.mrf.mxu0  ;;  %v1522_v58 = vpop.f32.mrf.mxu1 }
 0x114   :  { %v1218_v62 = vadd.f32 %v1217_v50, %v1135_v55 }
 0x115   :  { %v1137_v57 = vpop.f32.mrf.mxu0  ;;  %v1524_v60 = vpop.f32.mrf.mxu1 }
 0x116   :  { %v1220_v5 = vadd.f32 %v1219_v52, %v1137_v57  ;;  %v562_v52 = vadd.f32 %v2397_v35, %v488_v32 }
 0x117   :  { %v1294_v59 = vpop.f32.mrf.mxu0  ;;  %v1684_v63 = vpop.f32.mrf.mxu1 }
 0x118   :  { %v1295_v7 = vadd.f32 %v1294_v59, %v1218_v62  ;;  %v564_v59 = vadd.f32 %v2399_v37, %v490_v45  ;;  %v1031_v62 = vadd.f32 %v2403_v48, %v957_v43 }
 0x119   :  { %v1296_v61 = vpop.f32.mrf.mxu0  ;;  %v1686_v8 = vpop.f32.mrf.mxu1 }
 0x11a   :  { %v1297_v14 = vadd.f32 %v1296_v61, %v1220_v5  ;;  %v1371_v18 = vadd.f32 %v1370_v54, %v1295_v7  ;;  %v2008_v54 = vrot.slane %v2098_v38, 1 }
 0x11b   :  { %v1448_v2 = vpop.f32.mrf.mxu0  ;;  %v1837_v15 = vpop.f32.mrf.mxu1 }
 0x11c   :  { %v1373_v22 = vadd.f32 %v1372_v56, %v1297_v14  ;;  %v1449_v28 = vadd.f32 %v1448_v2, %v1371_v18  ;;  %v2205_v14 = vmov 1983009808  }
 0x11d   :  { %v1450_v11 = vpop.f32.mrf.mxu0  ;;  %v1839_v26 = vpop.f32.mrf.mxu1  ;;  %v2052_v17 = vunpack.c.l.s4 %v2205_v14 }
 0x11e   :  { %v1451_v39 = vadd.f32 %v1450_v11, %v1373_v22  ;;  %v1523_v49 = vadd.f32 %v1522_v58, %v1449_v28 }
 0x11f   :  { %v1602_v6 = vpop.f32.mrf.mxu0  ;;  %v1989_v47 = vpop.f32.mrf.mxu1  ;;  %v2053_v18 = vunpack.c.0.s8 %v2052_v17 }
 0x120   :  { %v1685_v23 = vadd.f32 %v1684_v63, %v1602_v6  ;;  %v1525_v56 = vadd.f32 %v1524_v60, %v1451_v39  ;;  %v1994_v53 = vadd.f32 %v1523_v49, %v562_v52 }
 0x121   :  { %v1604_v20 = vpop.f32.mrf.mxu0  ;;  %v1991_v61 = vpop.f32.mrf.mxu1 }
 0x122   :  { %v1687_v29 = vadd.f32 %v1686_v8, %v1604_v20  ;;  %v1995_v0 = vadd.f32 %v1525_v56, %v564_v59  ;;  %v2014_v3 = vadd.f32 %v2098_v38, %v1994_v53 }
 0x123   :  { %v1761_v25 = vpop.f32.mrf.mxu0 }
 0x124   :  { %v1762_v30 = vadd.f32 %v1761_v25, %v1685_v23  ;;  %v2015_v46 = vadd.f32 %v2007_v1, %v1995_v0  ;;  %v2056_v23 = vsub.s32 %v2053_v18, %v2248_v4 }
 0x125   :  { %v1763_v34 = vpop.f32.mrf.mxu0 }
 0x126   :  { %v1838_v41 = vadd.f32 %v1837_v15, %v1762_v30  ;;  %v1764_v44 = vadd.f32 %v1763_v34, %v1687_v29 }
 0x127   :  { %v1915_v31 = vpop.f32.mrf.mxu0 }
 0x128   :  { %v1840_v50 = vadd.f32 %v1839_v26, %v1764_v44  ;;  %v1916_v33 = vadd.f32 %v1915_v31, %v1838_v41 }
 0x129   :  { %v1917_v55 = vpop.f32.mrf.mxu0 }
 0x12a   :  { %v1990_v51 = vadd.f32 %v1989_v47, %v1916_v33  ;;  %v1918_v57 = vadd.f32 %v1917_v55, %v1840_v50 }
 0x12c   :  { %v1996_v58 = vadd.f32 %v1990_v51, %v1029_v40  ;;  %v1992_v63 = vadd.f32 %v1991_v61, %v1918_v57 }
 0x12e   :  { %v2016_v2 = vadd.f32 %v2008_v54, %v1996_v58  ;;  %v1997_v35 = vadd.f32 %v1992_v63, %v1031_v62 }
 0x130   :  { %v2017_v5 = vadd.f32 %v2009_v42, %v1997_v35  ;;  %v2022_v7 = vrot.slane %v2016_v2, 7 }
 0x132   :  { %v2024_v60 = vsel %vm2023_vm3, %v2022_v7, %v2014_v3  ;;  %v2025_v8 = vrot.slane %v2017_v5, 7 }
 0x133   :  { %v2030_v9 = vsel %vm2029_vm4, %v2024_v60, -inf }
 0x134   :  { %v2026_v37 = vsel %vm2023_vm3, %v2025_v8, %v2015_v46 }
 0x135   :  { %v2031_v10 = vsel %vm2029_vm4, %v2026_v37, -inf }
 0x136   :  { %v2032_v48 = vmax.f32 %v2030_v9, %v2031_v10 }
 0x138   :  { %2033 = vmax.xlane.f32.xlu0 %v2032_v48 }
 0x1c1   :  { %v2034_v11 = vpop.xlane.xlu0 %2033 }
 0x1c2   :  { %v2035_v12 = vmax.f32 %v2034_v11, 1.0 }
 0x1c4   :  { %v2037_v13 = vrot.slane %v2035_v12, 1  ;;  %2108 = vrcp.f32 %v2035_v12 }
 0x1c6   :  { %2110 = vrcp.f32 %v2037_v13 }
 0x1d1   :  { %v2109_v6 = vpop.eup %2108 }
 0x1d2   :  { %v2041_v15 = vmul.f32 %v2109_v6, %v2014_v3  ;;  %v2042_v16 = vmul.f32 %v2109_v6, %v2015_v46 }
 0x1d3   :  { %v2111_v19 = vpop.eup %2110 }
 0x1d4   :  { %v2044_v20 = vmul.f32 %v2111_v19, %v2016_v2  ;;  %v2045_v21 = vmul.f32 %v2111_v19, %v2017_v5  ;;  %v2050_v22 = vcombine.low %v2041_v15, %v2042_v16 }
 0x1d6   :  { %v2058_v24 = vcombine.low %v2044_v20, %v2045_v21  ;;  %v2057_v26 = vrot.slane %v2050_v22, %v2056_v23 }
 0x1d8   :  { %v2065_v25 = vrot.slane %v2058_v24, %v2056_v23 }
 0x1da   :  { %v2070_v27 = vrot.slane %v2065_v25, 7 }
 0x1dc   :  { %v2071_v28 = vsel %vm2023_vm3, %v2070_v27, %v2057_v26 }
 0x1dd   :  { %v2073_v29 = vsel %vm2072_vm5, %v2070_v27, %v2071_v28 }
 0x1de   :  { %v2075_v30 = vsel %vm2074_vm6, %v2070_v27, %v2073_v29 }
 0x1df   :  { %v2077_v32 = vsel %vm2076_vm7, %v2070_v27, %v2075_v30 }
 0x1e0   :  { %2079 = vst [vmem:[#allocation8] sm:$0xf] %v2077_v32 }
 0x1e1   :  { %2183 = shalt.err (!%p2180_p5)
}
 0x1e2   :  { %2089 = dma.vmem_to_hbm [thread:$0]  %s2087_s10, 64, %s2421_s5, [#allocation4]  }
 0x1e3   :  { %2196 = dma.done.wait [#allocation4], 64  }
 0x1e4   :  { %2197 = vsyncadd [#allocation4], 4294967232 }
 0x1e5   :  { %2093 = vsyncpa [#allocation3], 1 }
 0x1e6   :  { %2094 = vsyncpa [#allocation6], 1 }
 0x1e7   :  { %2095 = vsyncpa [#allocation4], 1 }

</bundles_post_ra>
